<compile_context>
chip_gen: v6e
topology: v6e:2x2x1
jax: 0.10.0
libtpu: 0.0.40
codegen_flags: <defaults>
</compile_context>

<pallas_src>
import jax
import jax.numpy as jnp
from jax.experimental import pallas as pl
from jax.experimental.pallas import tpu as pltpu

LN_EPS = 1e-12  # BERT LayerNorm eps


def _gelu_tanh(x):
    # GELU (tanh approximation). TODO(synk): HF BERT's default "gelu" is erf-based; the tanh
    # form differs by <~1e-3 — switch to an erf GELU if exact parity is required.
    c = 0.7978845608028654  # sqrt(2/pi)
    return 0.5 * x * (1.0 + jnp.tanh(c * (x + 0.044715 * x * x * x)))


def _round_up(a, b):
    return (a + b - 1) // b * b


def _pick_vmem_limit():
    """Per-generation scoped-VMEM budget (~75% of physical, capped)."""
    try:
        cap = pltpu.get_tpu_info().vmem_capacity_bytes
    except Exception:
        cap = 64 * 1024 * 1024  # conservative fallback (v7x-sized)
    return min(int(cap * 3 // 4), 112 * 1024 * 1024)


def mlm_head_kernel(x_ref, wt_ref, bt_ref, g_ref, b_ref, wd_ref, bd_ref, o_ref, h_ref):
    # x_ref : (TM, H)  bf16   row-tile of activations
    # wt_ref: (H, H)   bf16   transform weight ([in, out]) — grid-invariant
    # bt_ref: (1, H)   f32    transform bias
    # g_ref : (1, H)   f32    LayerNorm gamma
    # b_ref : (1, H)   f32    LayerNorm beta
    # wd_ref: (H, TN)  bf16   decoder weight tile (tile-major, leading dim squeezed)
    # bd_ref: (1, TN)  f32    mlm bias tile
    # o_ref : (TM, TN)        logits tile
    # h_ref : (TM, H)  bf16   VMEM scratch: transformed hidden, cached across vocab tiles
    j = pl.program_id(1)

    @pl.when(j == 0)
    def _():
        # Transform + GELU + LayerNorm: computed once per row tile (vocab axis is innermost).
        h = jnp.dot(x_ref[...], wt_ref[...], preferred_element_type=jnp.float32)
        h = h + bt_ref[...]
        h = _gelu_tanh(h)
        # One-pass variance (E[h^2] - mean^2); clamp to 0 against rounding cancellation.
        mean = jnp.mean(h, axis=-1, keepdims=True)
        m2 = jnp.mean(h * h, axis=-1, keepdims=True)
        var = jnp.maximum(m2 - mean * mean, 0.0)
        h = (h - mean) * jax.lax.rsqrt(var + LN_EPS)
        h = h * g_ref[...] + b_ref[...]
        h_ref[...] = h.astype(h_ref.dtype)

    # Decoder projection for this vocab tile (bf16 x bf16 -> f32 accumulate).
    o_ref[...] = (
        jnp.dot(h_ref[...], wd_ref[...], preferred_element_type=jnp.float32)
        + bd_ref[...]
    ).astype(o_ref.dtype)


def mlm_head(x, wt, bt, gamma, beta, wd, bd, *, tm=1024, tn=None,
             out_dtype=jnp.bfloat16):
    """x: [B, S, H] float32. wt: [H, H], wd: [H, V] (pre-transposed [in, out]).

    Returns logits [B, S, V] in `out_dtype`. Default bf16 halves the logits HBM
    writeback (the second-largest stream of this memory-bound kernel); pass
    jnp.float32 if the downstream softmax/loss needs full-precision logits.
    """
    B, S, H = x.shape
    V = wd.shape[1]
    N = B * S

    vmem_limit = _pick_vmem_limit()
    if tn is None:
        # More VMEM (v5e/v6e 128 MiB) -> bigger vocab tile: fewer grid steps, longer DMAs.
        tn = 2048 if vmem_limit >= 80 * 1024 * 1024 else 1024

    # Effective tiles: 8-aligned row tile, 128-aligned vocab tile (clamped for tiny N/V).
    rows8 = _round_up(N, 8)
    tm_eff = min(tm, rows8)
    if tm_eff >= rows8 and rows8 >= 16:
        # Guarantee >= 2 row tiles so the "parallel" axis feeds both v7x TensorCores.
        tm_eff = _round_up((rows8 + 1) // 2, 8)
    n_pad = _round_up(rows8, tm_eff)
    tn_eff = min(tn, _round_up(V, 128))
    v_pad = _round_up(V, tn_eff)

    # Host-side prep: bf16 matmul operands, f32 bias/LN params, zero-pad to tile multiples.
    x2 = x.reshape(N, H).astype(jnp.bfloat16)
    if n_pad != N:
        x2 = jnp.pad(x2, ((0, n_pad - N), (0, 0)))
    wt_b = wt.astype(jnp.bfloat16)
    wd_b = wd.astype(jnp.bfloat16)
    bd2 = bd.reshape(1, V).astype(jnp.float32)
    if v_pad != V:
        wd_b = jnp.pad(wd_b, ((0, 0), (0, v_pad - V)))
        bd2 = jnp.pad(bd2, ((0, 0), (0, v_pad - V)))
    bt2 = bt.reshape(1, H).astype(jnp.float32)
    g2 = gamma.reshape(1, H).astype(jnp.float32)
    be2 = beta.reshape(1, H).astype(jnp.float32)

    # Tile-major decoder weight: (V//tn, H, tn) — each streamed block is one contiguous DMA.
    # TODO(synk): in a real deployment pre-compute this re-layout once at weight-load time.
    n_vtiles = v_pad // tn_eff
    wd_tiles = wd_b.reshape(H, n_vtiles, tn_eff).transpose(1, 0, 2)

    grid_rows = n_pad // tm_eff
    grid_vocab = n_vtiles

    out_itemsize = jnp.dtype(out_dtype).itemsize
    cost = pl.CostEstimate(
        flops=int(2 * n_pad * H * H + 2 * n_pad * H * v_pad),
        transcendentals=int(n_pad * H),
        bytes_accessed=int(
            n_pad * H * 2                       # x (bf16)
            + H * H * 2                         # transform weight (resident)
            + grid_rows * H * v_pad * 2         # decoder weight streamed per row tile
            + n_pad * v_pad * out_itemsize      # logits writeback
        ),
    )

    out = pl.pallas_call(
        mlm_head_kernel,
        out_shape=jax.ShapeDtypeStruct((n_pad, v_pad), out_dtype),
        grid_spec=pltpu.PrefetchScalarGridSpec(
            num_scalar_prefetch=0,
            grid=(grid_rows, grid_vocab),
            in_specs=[
                pl.BlockSpec((tm_eff, H), lambda i, j: (i, 0)),        # x row tile
                # TODO(synk): wt is grid-invariant; if Pallas double-buffers it, a
                # Buffered(1)/manual-resident copy would reclaim ~H*H*2 bytes of VMEM.
                pl.BlockSpec((H, H), lambda i, j: (0, 0)),             # transform weight
                pl.BlockSpec((1, H), lambda i, j: (0, 0)),             # transform bias
                pl.BlockSpec((1, H), lambda i, j: (0, 0)),             # LN gamma
                pl.BlockSpec((1, H), lambda i, j: (0, 0)),             # LN beta
                pl.BlockSpec((None, H, tn_eff), lambda i, j: (j, 0, 0)),  # wd tile (contiguous)
                pl.BlockSpec((1, tn_eff), lambda i, j: (0, j)),        # mlm bias tile
            ],
            out_specs=pl.BlockSpec((tm_eff, tn_eff), lambda i, j: (i, j)),
            scratch_shapes=[pltpu.VMEM((tm_eff, H), jnp.bfloat16)],    # cached hidden h
        ),
        compiler_params=pltpu.CompilerParams(
            # rows split across TensorCores (megacore); vocab is sequential so the
            # h-scratch caching pattern stays per-core.
            dimension_semantics=("parallel", "arbitrary"),
            # Per-generation budget: ~96 MiB on 128 MiB v5e/v6e, ~48 MiB on 64 MiB v7x.
            vmem_limit_bytes=vmem_limit,
        ),
        cost_estimate=cost,
    )(x2, wt_b, bt2, g2, be2, wd_tiles, bd2)

    return out[:N, :V].reshape(B, S, V)


def mlm_head_ref(x, wt, bt, gamma, beta, wd, bd):
    """Pure-JAX reference mirroring the kernel math (bf16 matmul operands, f32 elsewhere)."""
    h = jnp.dot(
        x.astype(jnp.bfloat16), wt.astype(jnp.bfloat16),
        preferred_element_type=jnp.float32,
    ) + bt
    h = _gelu_tanh(h)
    mean = jnp.mean(h, axis=-1, keepdims=True)
    var = jnp.mean((h - mean) ** 2, axis=-1, keepdims=True)
    h = (h - mean) * jax.lax.rsqrt(var + LN_EPS)
    h = h * gamma + beta
    return jnp.dot(
        h.astype(jnp.bfloat16), wd.astype(jnp.bfloat16),
        preferred_element_type=jnp.float32,
    ) + bd


if __name__ == "__main__":
    # Small config consistent with the module: hidden_size=32, vocab_size=128.
    B, S, H, V = 2, 8, 32, 128

    key = jax.random.PRNGKey(0)
    kx, kwt, kbt, kwd = jax.random.split(key, 4)

    x = jax.random.normal(kx, (B, S, H), dtype=jnp.float32)

    # Deterministic parameter init (BERT-style: N(0, 0.02) for weights).
    wt_pt = 0.02 * jax.random.normal(kwt, (H, H), dtype=jnp.float32)   # transform.dense.weight [out,in]
    bt = 0.02 * jax.random.normal(kbt, (H,), dtype=jnp.float32)        # transform.dense.bias
    gamma = jnp.ones((H,), dtype=jnp.float32)                          # transform.LayerNorm.weight
    beta = jnp.zeros((H,), dtype=jnp.float32)                          # transform.LayerNorm.bias
    wd_pt = 0.02 * jax.random.normal(kwd, (V, H), dtype=jnp.float32)   # decoder.weight [vocab,hidden]
    bd = jnp.zeros((V,), dtype=jnp.float32)                            # self.bias (zeros in __init__)

    # Pre-transpose to [in, out] for row-major `x @ W` on the MXU.
    wt = wt_pt.T
    wd = wd_pt.T

    ref = mlm_head_ref(x, wt, bt, gamma, beta, wd, bd)

    # Full-precision logits path (strict check against the reference).
    out_f32 = mlm_head(x, wt, bt, gamma, beta, wd, bd, out_dtype=jnp.float32)
    out_f32 = jax.block_until_ready(out_f32)
    assert out_f32.shape == (B, S, V), out_f32.shape
    err_f32 = float(jnp.max(jnp.abs(out_f32 - ref)))
    assert jnp.allclose(out_f32, ref, atol=1e-3, rtol=1e-3), err_f32

    # Default bf16-logits path (halves logits HBM writeback; looser tolerance).
    out_bf = mlm_head(x, wt, bt, gamma, beta, wd, bd)
    out_bf = jax.block_until_ready(out_bf)
    assert out_bf.dtype == jnp.bfloat16, out_bf.dtype
    err_bf = float(jnp.max(jnp.abs(out_bf.astype(jnp.float32) - ref)))
    assert jnp.allclose(out_bf.astype(jnp.float32), ref, atol=2e-2, rtol=2e-2), err_bf

    print("KERNEL_OK")
</pallas_src>

<mosaic_0001>
module attributes {stable_mosaic.version = 11 : i64} {
  func.func @mlm_head_kernel(%arg0: i32, %arg1: i32, %arg2: memref<8x32xbf16, #tpu.memory_space<vmem>>, %arg3: memref<32x32xbf16, #tpu.memory_space<vmem>>, %arg4: memref<1x32xf32, #tpu.memory_space<vmem>>, %arg5: memref<1x32xf32, #tpu.memory_space<vmem>>, %arg6: memref<1x32xf32, #tpu.memory_space<vmem>>, %arg7: memref<1x32x128xbf16, #tpu.memory_space<vmem>>, %arg8: memref<1x128xf32, #tpu.memory_space<vmem>>, %arg9: memref<8x128xf32, #tpu.memory_space<vmem>>, %arg10: memref<8x32xbf16, #tpu.memory_space<vmem>>) attributes {dimension_semantics = [#tpu.dimension_semantics<parallel>, #tpu.dimension_semantics<arbitrary>], iteration_bounds = array<i64: 2, 1>, scalar_prefetch = 0 : i64, scratch_operands = 1 : i64, tpu.core_type = #tpu.core_type<tc>, window_params = [{transform_indices = @transform_0, window_bounds = array<i64: 8, 32>}, {pipeline_mode = #tpu.pipeline_mode<synchronous>, transform_indices = @transform_1, window_bounds = array<i64: 32, 32>}, {pipeline_mode = #tpu.pipeline_mode<synchronous>, transform_indices = @transform_2, window_bounds = array<i64: 1, 32>}, {pipeline_mode = #tpu.pipeline_mode<synchronous>, transform_indices = @transform_3, window_bounds = array<i64: 1, 32>}, {pipeline_mode = #tpu.pipeline_mode<synchronous>, transform_indices = @transform_4, window_bounds = array<i64: 1, 32>}, {transform_indices = @transform_5, window_bounds = array<i64: 1, 32, 128>}, {transform_indices = @transform_6, window_bounds = array<i64: 1, 128>}, {transform_indices = @transform_7, window_bounds = array<i64: 8, 128>}]} {
    %c0_i32 = arith.constant 0 : i32
    %0 = arith.cmpi eq, %arg1, %c0_i32 : i32
    %1 = arith.extui %0 : i1 to i32
    %c0_i32_0 = arith.constant 0 : i32
    %2 = arith.cmpi ne, %1, %c0_i32_0 : i32
    scf.if %2 {
      %c0_9 = arith.constant 0 : index
      %c0_10 = arith.constant 0 : index
      %11 = vector.load %arg2[%c0_9, %c0_10] : memref<8x32xbf16, #tpu.memory_space<vmem>>, vector<8x32xbf16>
      %c0_11 = arith.constant 0 : index
      %c0_12 = arith.constant 0 : index
      %12 = vector.load %arg3[%c0_11, %c0_12] : memref<32x32xbf16, #tpu.memory_space<vmem>>, vector<32x32xbf16>
      %cst_13 = arith.constant dense<0.000000e+00> : vector<8x32xf32>
      %13 = tpu.matmul %11, %12, %cst_13 {dimension_numbers = #tpu.dot_dimension_numbers<[1], [0], [0], [1], [0, 0, 1, 1], [], []>} : vector<8x32xbf16>, vector<32x32xbf16>, vector<8x32xf32> -> vector<8x32xf32>
      %c0_14 = arith.constant 0 : index
      %c0_15 = arith.constant 0 : index
      %14 = vector.load %arg4[%c0_14, %c0_15] : memref<1x32xf32, #tpu.memory_space<vmem>>, vector<1x32xf32>
      %15 = vector.broadcast %14 : vector<1x32xf32> to vector<8x32xf32>
      %16 = arith.addf %13, %15 : vector<8x32xf32>
      %cst_16 = arith.constant 5.000000e-01 : f32
      %17 = vector.broadcast %cst_16 : f32 to vector<8x32xf32>
      %18 = arith.mulf %17, %16 : vector<8x32xf32>
      %cst_17 = arith.constant 4.471500e-02 : f32
      %19 = vector.broadcast %cst_17 : f32 to vector<8x32xf32>
      %20 = arith.mulf %19, %16 : vector<8x32xf32>
      %21 = arith.mulf %20, %16 : vector<8x32xf32>
      %22 = arith.mulf %21, %16 : vector<8x32xf32>
      %23 = arith.addf %16, %22 : vector<8x32xf32>
      %cst_18 = arith.constant 0.797884583 : f32
      %24 = vector.broadcast %cst_18 : f32 to vector<8x32xf32>
      %25 = arith.mulf %24, %23 : vector<8x32xf32>
      %26 = math.tanh %25 : vector<8x32xf32>
      %cst_19 = arith.constant 1.000000e+00 : f32
      %27 = vector.broadcast %cst_19 : f32 to vector<8x32xf32>
      %28 = arith.addf %27, %26 : vector<8x32xf32>
      %29 = arith.mulf %18, %28 : vector<8x32xf32>
      %cst_20 = arith.constant dense<0.000000e+00> : vector<8xf32>
      %30 = vector.multi_reduction <add>, %29, %cst_20 [1] : vector<8x32xf32> to vector<8xf32>
      %31 = vector.shape_cast %30 : vector<8xf32> to vector<8x1xf32>
      %cst_21 = arith.constant 3.200000e+01 : f32
      %32 = vector.broadcast %cst_21 : f32 to vector<8x1xf32>
      %33 = arith.divf %31, %32 : vector<8x1xf32>
      %34 = arith.mulf %29, %29 : vector<8x32xf32>
      %cst_22 = arith.constant dense<0.000000e+00> : vector<8xf32>
      %35 = vector.multi_reduction <add>, %34, %cst_22 [1] : vector<8x32xf32> to vector<8xf32>
      %36 = vector.shape_cast %35 : vector<8xf32> to vector<8x1xf32>
      %cst_23 = arith.constant 3.200000e+01 : f32
      %37 = vector.broadcast %cst_23 : f32 to vector<8x1xf32>
      %38 = arith.divf %36, %37 : vector<8x1xf32>
      %39 = arith.mulf %33, %33 : vector<8x1xf32>
      %40 = arith.subf %38, %39 : vector<8x1xf32>
      %cst_24 = arith.constant 0.000000e+00 : f32
      %41 = vector.broadcast %cst_24 : f32 to vector<8x1xf32>
      %42 = arith.maximumf %40, %41 : vector<8x1xf32>
      %43 = vector.broadcast %33 : vector<8x1xf32> to vector<8x32xf32>
      %44 = arith.subf %29, %43 : vector<8x32xf32>
      %cst_25 = arith.constant 9.99999996E-13 : f32
      %45 = vector.broadcast %cst_25 : f32 to vector<8x1xf32>
      %46 = arith.addf %42, %45 : vector<8x1xf32>
      %47 = math.rsqrt %46 : vector<8x1xf32>
      %48 = vector.broadcast %47 : vector<8x1xf32> to vector<8x32xf32>
      %49 = arith.mulf %44, %48 : vector<8x32xf32>
      %c0_26 = arith.constant 0 : index
      %c0_27 = arith.constant 0 : index
      %50 = vector.load %arg5[%c0_26, %c0_27] : memref<1x32xf32, #tpu.memory_space<vmem>>, vector<1x32xf32>
      %51 = vector.broadcast %50 : vector<1x32xf32> to vector<8x32xf32>
      %52 = arith.mulf %49, %51 : vector<8x32xf32>
      %c0_28 = arith.constant 0 : index
      %c0_29 = arith.constant 0 : index
      %53 = vector.load %arg6[%c0_28, %c0_29] : memref<1x32xf32, #tpu.memory_space<vmem>>, vector<1x32xf32>
      %54 = vector.broadcast %53 : vector<1x32xf32> to vector<8x32xf32>
      %55 = arith.addf %52, %54 : vector<8x32xf32>
      %56 = arith.truncf %55 : vector<8x32xf32> to vector<8x32xbf16>
      %c0_30 = arith.constant 0 : index
      %c0_31 = arith.constant 0 : index
      %57 = vector.load %arg10[%c0_30, %c0_31] : memref<8x32xbf16, #tpu.memory_space<vmem>>, vector<8x32xbf16>
      tpu.vector_store %arg10[%c0_30, %c0_31], %56 {strides = array<i32>} : memref<8x32xbf16, #tpu.memory_space<vmem>>, vector<8x32xbf16>,
    } else {
    }
    %c0 = arith.constant 0 : index
    %c0_1 = arith.constant 0 : index
    %3 = vector.load %arg10[%c0, %c0_1] : memref<8x32xbf16, #tpu.memory_space<vmem>>, vector<8x32xbf16>
    %c0_2 = arith.constant 0 : index
    %c0_3 = arith.constant 0 : index
    %c0_4 = arith.constant 0 : index
    %4 = vector.load %arg7[%c0_2, %c0_3, %c0_4] : memref<1x32x128xbf16, #tpu.memory_space<vmem>>, vector<1x32x128xbf16>
    %5 = vector.shape_cast %4 : vector<1x32x128xbf16> to vector<32x128xbf16>
    %cst = arith.constant dense<0.000000e+00> : vector<8x128xf32>
    %6 = tpu.matmul %3, %5, %cst {dimension_numbers = #tpu.dot_dimension_numbers<[1], [0], [0], [1], [0, 0, 1, 1], [], []>} : vector<8x32xbf16>, vector<32x128xbf16>, vector<8x128xf32> -> vector<8x128xf32>
    %c0_5 = arith.constant 0 : index
    %c0_6 = arith.constant 0 : index
    %7 = vector.load %arg8[%c0_5, %c0_6] : memref<1x128xf32, #tpu.memory_space<vmem>>, vector<1x128xf32>
    %8 = vector.broadcast %7 : vector<1x128xf32> to vector<8x128xf32>
    %9 = arith.addf %6, %8 : vector<8x128xf32>
    %c0_7 = arith.constant 0 : index
    %c0_8 = arith.constant 0 : index
    %10 = vector.load %arg9[%c0_7, %c0_8] : memref<8x128xf32, #tpu.memory_space<vmem>>, vector<8x128xf32>
    tpu.vector_store %arg9[%c0_7, %c0_8], %9 {strides = array<i32>} : memref<8x128xf32, #tpu.memory_space<vmem>>, vector<8x128xf32>,
    return
  }
  func.func @transform_0(%arg0: i32, %arg1: i32) -> (i32, i32) {
    %c0_i32 = arith.constant 0 : i32
    %c0_i32_0 = arith.constant 0 : i32
    return %arg0, %c0_i32 : i32, i32
  }
  func.func @transform_1(%arg0: i32, %arg1: i32) -> (i32, i32) {
    %c0_i32 = arith.constant 0 : i32
    %c0_i32_0 = arith.constant 0 : i32
    %c0_i32_1 = arith.constant 0 : i32
    return %c0_i32, %c0_i32_0 : i32, i32
  }
  func.func @transform_2(%arg0: i32, %arg1: i32) -> (i32, i32) {
    %c0_i32 = arith.constant 0 : i32
    %c0_i32_0 = arith.constant 0 : i32
    %c0_i32_1 = arith.constant 0 : i32
    return %c0_i32, %c0_i32_0 : i32, i32
  }
  func.func @transform_3(%arg0: i32, %arg1: i32) -> (i32, i32) {
    %c0_i32 = arith.constant 0 : i32
    %c0_i32_0 = arith.constant 0 : i32
    %c0_i32_1 = arith.constant 0 : i32
    return %c0_i32, %c0_i32_0 : i32, i32
  }
  func.func @transform_4(%arg0: i32, %arg1: i32) -> (i32, i32) {
    %c0_i32 = arith.constant 0 : i32
    %c0_i32_0 = arith.constant 0 : i32
    %c0_i32_1 = arith.constant 0 : i32
    return %c0_i32, %c0_i32_0 : i32, i32
  }
  func.func @transform_5(%arg0: i32, %arg1: i32) -> (i32, i32, i32) {
    %c0_i32 = arith.constant 0 : i32
    %c0_i32_0 = arith.constant 0 : i32
    %c0_i32_1 = arith.constant 0 : i32
    return %arg1, %c0_i32, %c0_i32_0 : i32, i32, i32
  }
  func.func @transform_6(%arg0: i32, %arg1: i32) -> (i32, i32) {
    %c0_i32 = arith.constant 0 : i32
    %c0_i32_0 = arith.constant 0 : i32
    return %c0_i32, %arg1 : i32, i32
  }
  func.func @transform_7(%arg0: i32, %arg1: i32) -> (i32, i32) {
    %c0_i32 = arith.constant 0 : i32
    return %arg0, %arg1 : i32, i32
  }
}

</mosaic_0001>

<bundles_post_ra>
// kernel: tpu_custom_call.1
= control target key start
LH: loop header
LB: loop body
LE: loop exit
PB: predicated region body
PF: predicated region fallthrough
CT: control target
= control target key end

     0   :  { %s1235_s0 = inlined_call_operand.hbm [shape: bf16[16,32], index: 0, kind: input, shape index: {}]   ;;  %s1236_s1 = inlined_call_operand.hbm [shape: bf16[32,32], index: 1, kind: input, shape index: {}]   ;;  %s1237_s2 = inlined_call_operand.vmem [shape: f32[1,32], index: 2, kind: input, shape index: {}]   ;;  %s1238_s3 = inlined_call_operand.vmem [shape: f32[1,32], index: 3, kind: input, shape index: {}]   ;;  %s1239_s4 = inlined_call_operand.vmem [shape: f32[1,32], index: 4, kind: input, shape index: {}]   ;;  %s1240_s5 = inlined_call_operand.hbm [shape: bf16[1,32,128], index: 5, kind: input, shape index: {}]   ;;  %s1241_s6 = inlined_call_operand.vmem [shape: f32[1,128], index: 6, kind: input, shape index: {}]   ;;  %s1242_s7 = inlined_call_operand.hbm [shape: f32[16,128], index: 7, kind: output, shape index: {}]  }
   0x1   :  { %1247 = sst [smem:[#allocation14_spill]] %s1236_s1 }
   0x2   :  { %1248 = sst [smem:[#allocation15_spill]] %s1240_s5 }
   0x3   :  { %12 = vsyncpa [#allocation4], 0 }
   0x4   :  { %14 = vsyncpa [#allocation4 + $0x1], 0 }
   0x5   :  { %15 = vsyncpa [#allocation7], 0 }
   0x6   :  { %16 = vsyncpa [#allocation5], 0 }
   0x7   :  { %18 = vsyncpa [#allocation5 + $0x1], 0  ;;  %s1032_s24 = smov 0   ;;  %s1034_s25 = smov 0  }
   0x8   :  { %s1036_s26 = smov 0   ;;  %s1038_s27 = smov 0  }
   0x9   :  { %s1040_s28 = smov 0   ;;  %s1042_s29 = smov 0  }
   0xa LB: > { %s673_s30 = sadd.s32 4294967295, %s982_s29   ;;  %s674_s8 = sadd.s32 4294967294, %s982_s29   ;;  %s982_s29 = sphi %s1042_s29, %s24_s29   ;;  %s978_s28 = sphi %s1040_s28, %s1269_s28   ;;  %s974_s27 = sphi %s1038_s27, %s1268_s27   ;;  %s970_s26 = sphi %s1036_s26, %s1267_s26   ;;  %s966_s25 = sphi %s1034_s25, %s1266_s25   ;;  %s962_s24 = sphi %s1032_s24, %s1265_s24  }
   0xb   : > { %p56_p0 = scmp.ne.s32.totalorder %s966_s25, %s962_s24  ;;  %p1066_p1 = scmp.eq.s32.totalorder %s673_s30, 0 }
   0xc   : > { %p1070_p2 = scmp.eq.s32.totalorder %s673_s30, 1  ;;  %p224_p3 = scmp.eq.s32.totalorder %s674_s8, 1 }
   0xd   : > { %s1249_s9 = scalar_select %p1066_p1, 1, 0 }
   0xe   : > { %p1076_p4 = por %p1066_p1, %p56_p0  ;;  %p675_p5 = scmp.ge.s32.totalorder %s982_s29, 1 }
   0xf   : > { %p1081_p6 = por %p224_p3, %p56_p0  ;;  %p231_p7 = scmp.lt.s32.totalorder %s982_s29, 3 }
  0x10   : > { %s1251_s11 = scalar_select %p1076_p4, 1, 0 }
  0x11   : > { %s1252_s12 = scalar_select %p1081_p6, 1, 0 }
  0x12   : > { %p1086_p8 = pnand %p675_p5, %p231_p7  ;;  %s984_s14 = smov [#allocation6]  }
  0x13   : > { %s243_s15 = sshll.u32 %s984_s14, 4  ;;  %s985_s17 = smov [#allocation8]   ;;  %s244_s15 = int_to_ptr.vmem [resolvable:$true] %s243_s15 }
  0x14   : > { %p735_p9 = pneg %p1086_p8  ;;  %s268_s18 = sshll.u32 %s985_s17, 4  ;;  %s269_s18 = int_to_ptr.vmem [resolvable:$true] %s268_s18 }
  0x15   : > { %s829_s19 = scalar_lea.vmem %s244_s15, 256  ;;  %p837_p5 = scmp.lt.s32.totalorder %s244_s15, %s244_s15 }
  0x16   : > { %p1095_p11 = pnand %p735_p9, %p1066_p1  ;;  %p830_p13 = scmp.ne.s32.totalorder %s244_s15, %s829_s19 }
  0x17   : > { %p838_p7 = scmp.lt.s32.totalorder %s829_s19, %s829_s19 }
  0x18   : > { %p820_p12 = pneg %p1095_p11 }
  0x19   : > { %p839_p10 = por %p838_p7, %p837_p5 }
  0x1a   : > { %p832_p0 = pnand %p830_p13, %p820_p12 }
  0x1c   : > { %p833_p3 = pneg %p832_p0 }
  0x1e   : > { %p840_p9 = pnand %p839_p10, %p833_p3 }
  0x20   : > { %843 = shalt.err (!%p840_p9)
}
  0x21   : > { %s986_s20 = smov 64   ;;  %s987_s21 = smov 4  }
  0x22   : > { %s1255_s1 = sld [smem:[#allocation14_spill]]  ;;  %s855_s30 = scalar_lea.vmem %s269_s18, 256 }
  0x23   : > { %p856_p6 = scmp.ne.s32.totalorder %s269_s18, %s855_s30  ;;  %p863_p1 = scmp.lt.s32.totalorder %s269_s18, %s269_s18 }
  0x24   : > { %p864_p4 = scmp.lt.s32.totalorder %s855_s30, %s855_s30 }
  0x25   : > { %p858_p13 = pnand %p856_p6, %p820_p12 }
  0x26   : > { %p865_p5 = por %p864_p4, %p863_p1 }
  0x27   : > { %p859_p0 = pneg %p858_p13 }
  0x28   : > { %738 = dma.hbm_to_vmem [thread:$0]  (!%p1095_p11), %s1255_s1, 256, %s244_s15, [#allocation7], %s986_s20, %s986_s20, %s987_s21  }
  0x29   : > { %p866_p10 = pnand %p865_p5, %p859_p0 }
  0x2b   : > { %869 = shalt.err (!%p866_p10)
}
  0x2c   : > { %s1256_s5 = sld [smem:[#allocation15_spill]]  ;;  %s36_s15 = sadd.s32 1, %s978_s28 }
  0x2d   : > { %s43_s17 = sadd.s32 1, %s970_s26  ;;  %p38_p1 = scmp.ge.s32.totalorder %s36_s15, 2 }
  0x2e   : > { %p50_p4 = scmp.ne.s32.totalorder %s970_s26, %s966_s25  ;;  %p51_p6 = scmp.eq.s32.totalorder %s982_s29, 0 }
  0x2f   : > { %p752_p12 = scmp.lt.s32.totalorder %s982_s29, 2  ;;  %s1271_s15 = smov (%p38_p1, %s36_s15), 0 }
  0x30   : > { %1257 = sst [smem:[#allocation13_spill]] %s1271_s15  ;;  %p52_p3 = por %p51_p6, %p50_p4 }
  0x31   : > { %p1127_p7 = por %p1070_p2, %p50_p4  ;;  %s40_s19 = ssub.s32 %s978_s28, %s1271_s15 }
  0x32   : > { %741 = dma.hbm_to_vmem [thread:$0]  (!%p1095_p11), %s1256_s5, 256, %s269_s18, [#allocation7], %s986_s20, %s986_s20, %s987_s21  }
  0x33   : > { %s288_s22 = sand.u32 1, %s970_s26   ;;  %p41_p9 = scmp.eq.s32.totalorder %s40_s19, 0 }
  0x34   : > { %s680_s18 = sshll.u32 %s288_s22, 2  ;;  %s681_s20 = sshll.u32 %s978_s28, 6 }
  0x35   : > { %s1136_s21 = scalar_select %p41_p9, %s970_s26, %s43_s17  }
  0x36   : > { %s297_s8 = scalar_lea.hbm %s1235_s0, %s681_s20  ;;  %s292_s14 = scalar_lea.vmem [#allocation3], %s680_s18 }
  0x37   : > { %s299_s1 = sshll.u32 %s292_s14, 4  ;;  %p1143_p11 = pnand %p752_p12, %p52_p3  ;;  %s300_s1 = int_to_ptr.vmem [resolvable:$true] %s299_s1 }
  0x38   : > { %s289_s5 = scalar_lea.sflag [#allocation4], %s288_s22  ;;  %s883_s19 = scalar_lea.vmem %s300_s1, 64 }
  0x39   : > { %p872_p2 = pneg %p1143_p11  ;;  %p884_p13 = scmp.ne.s32.totalorder %s300_s1, %s883_s19 }
  0x3a   : > { %s988_s17 = smov [#allocation3]  }
  0x3b   : > { %p886_p0 = pnand %p884_p13, %p872_p2  ;;  %s888_s15 = sshll.u32 %s988_s17, 4  ;;  %s889_s15 = int_to_ptr.vmem [resolvable:$false] %s888_s15 }
  0x3c   : > { %s890_s20 = scalar_lea.vmem %s889_s15, 128  ;;  %p891_p10 = scmp.lt.s32.totalorder %s300_s1, %s889_s15 }
  0x3d   : > { %p887_p5 = pneg %p886_p0  ;;  %p892_p1 = scmp.lt.s32.totalorder %s890_s20, %s883_s19 }
  0x3f   : > { %p893_p4 = por %p892_p1, %p891_p10 }
  0x41   : > { %p894_p6 = pnand %p893_p4, %p887_p5 }
  0x43   : > { %897 = shalt.err (!%p894_p6)
}
  0x44   : > { %745 = dma.hbm_to_vmem [thread:$0]  (!%p1143_p11), %s297_s8, 64, %s300_s1, %s289_s5  }
  0x45   : > { %308 = sbr.rel (%p1086_p8) target bundleno = 701 (0x2bd), region = 48  ;;  %s1154_s22 = sand.u32 (!%p1086_p8), 1, %s966_s25  }
  0x46   : > { %s683_s18 = sshll.u32 (!%p1086_p8), %s1154_s22, 2  ;;  %s311_s23 = scalar_lea.sflag (!%p1086_p8), [#allocation4], %s1154_s22 }
  0x47   : > { %s314_s30 = scalar_lea.vmem (!%p1086_p8), [#allocation3], %s683_s18  ;;  %p1260_p12 = scmp.ne.s32.totalorder (!%p1086_p8), %s1251_s11, 0 }
  0x4a   : > { %949 = dma.done.wait (%p1260_p12), %s311_s23, 64  }
  0x4b   : > { %951 = vsyncadd (%p1260_p12), %s311_s23, 4294967232  ;;  %p1261_p3 = scmp.ne.s32.totalorder %s1249_s9, 0 }
  0x4d   : > { %953 = dma.done.wait (%p1261_p3), [#allocation7], 512  }
  0x4e   : > { %955 = vsyncadd (%p1261_p3), [#allocation7], 4294966784  ;;  %v989_v0 = vmov 0.0   ;;  %vm990_vm0 = vmmov 0   ;;  %v810_v1 = vld [vmem:[#allocation6 + $0x8] sm:$0xff]   ;;  %v811_v2 = vld [vmem:[#allocation6] sm:$0xff]  }
  0x4f   : > { %707 = vmatprep.subr.bf16.mxu0 %v989_v0  ;;  %711 = vmatprep.mubr.msk.bf16.mxu0 %vm990_vm0, %v989_v0  ;;  %v364_v3 = vld [vmem:[%s314_s30] sm:$0xf]  ;;  %vm388_vm1 = vcmask 261120   ;;  %v687_v4 = vld [vmem:[%s1237_s2] ss:$0 sm:$0xff]  ;;  %vm475_vm2 = vcmask 257024  }
  0x50   : > { %715 = vmatprep.subr.bf16.mxu1 %v989_v0  ;;  %719 = vmatprep.mubr.msk.bf16.mxu1 %vm990_vm0, %v989_v0  ;;  %v812_v22 = vld [vmem:[#allocation8 + $0x8] sm:$0xff]   ;;  %v813_v23 = vld [vmem:[#allocation8] sm:$0xff]   ;;  %s686_s8 = sshll.u32 %s1154_s22, 3  ;;  %s698_s19 = sshll.u32 %s974_s27, 7 }
  0x51   : > { %708 = vmatpush3.bf16.msra.mxu0 %v810_v1  ;;  %716 = vmatpush3.bf16.msra.mxu1 %v812_v22  ;;  %v691_v34 = vld [vmem:[%s1238_s3] ss:$0 sm:$0xff]  ;;  %s355_s17 = scalar_lea.vmem [#allocation9], %s686_s8  ;;  %s1187_s30 = scalar_lea.hbm %s1242_s7, %s698_s19 }
  0x52   : > { %709 = vmatprep.subr.bf16.mxu0 %v989_v0  ;;  %717 = vmatprep.subr.bf16.mxu1 %v989_v0  ;;  %v692_v36 = vld [vmem:[%s1239_s4] ss:$0 sm:$0xff]  ;;  %s561_s20 = sshll.u32 %s355_s17, 4  ;;  %s547_s1 = scalar_lea.sflag [#allocation5], %s1154_s22  ;;  %s1189_s20 = int_to_ptr.vmem [resolvable:$true] %s561_s20 }
  0x53   : > { %v693_v41 = vld [vmem:[%s1241_s6] ss:$0 sm:$0xff]  ;;  %s898_s5 = scalar_lea.vmem %s1189_s20, 128  ;;  %s991_s27 = smov [#allocation9]  }
  0x54   : > { %p899_p8 = scmp.ne.s32.totalorder %s1189_s20, %s898_s5  ;;  %s902_s9 = sshll.u32 %s991_s27, 4  ;;  %s903_s9 = int_to_ptr.vmem [resolvable:$false] %s902_s9 }
  0x55   : > { %710 = vmatpush3.bf16.msra.mxu0 %v811_v2  ;;  %718 = vmatpush3.bf16.msra.mxu1 %v813_v23  ;;  %s904_s11 = scalar_lea.vmem %s903_s9, 256  ;;  %p905_p2 = scmp.lt.s32.totalorder %s1189_s20, %s903_s9 }
  0x56   : > { %p900_p9 = pnand %p899_p8, %p1127_p7  ;;  %p906_p13 = scmp.lt.s32.totalorder %s904_s11, %s898_s5 }
  0x58   : > { %712 = vmatmul.mubr.msk.bf16.vlgmr.msra.gmra.mxu0 %vm388_vm1, %v364_v3  ;;  %p901_p11 = pneg %p900_p9  ;;  %p907_p0 = por %p906_p13, %p905_p2 }
  0x5a   : > { %p908_p5 = pnand %p907_p0, %p901_p11 }
 0x118   : > { %v426_v5 = vpop.f32.mrf.mxu0 }
 0x119   : > { %v427_v6 = vadd.f32 %v687_v4, %v426_v5 }
 0x11a   : > { %v713_v7 = vpop.f32.mrf.mxu0 }
 0x11b   : > { %v433_v8 = vmul.f32 0.044715, %v427_v6  ;;  %v432_v16 = vmul.f32 0.5, %v427_v6 }
 0x11c   : > { %v429_v9 = vpop.f32.mrf.mxu0 }
 0x11d   : > { %v434_v10 = vmul.f32 %v433_v8, %v427_v6 }
 0x11e   : > { %v714_v11 = vpop.f32.mrf.mxu0 }
 0x11f   : > { %v435_v12 = vmul.f32 %v434_v10, %v427_v6 }
 0x121   : > { %v436_v13 = vadd.f32 %v435_v12, %v427_v6 }
 0x123   : > { %v437_v14 = vmul.f32 0.7978846, %v436_v13 }
 0x125   : > { %814 = vtanh.f32 %v437_v14 }
 0x132   : > { %v815_v15 = vpop.eup %814 }
 0x133   : > { %v439_v17 = vadd.f32 1.0, %v815_v15 }
 0x135   : > { %v440_v18 = vmul.f32 %v439_v17, %v432_v16 }
 0x137   : > { %v441_v19 = vsel %vm388_vm1, %v440_v18, 0.0  ;;  %v446_v20 = vmul.f32 %v440_v18, %v440_v18 }
 0x138   : > { %442 = vadd.xlane.f32.xlu0 %v441_v19 }
 0x139   : > { %v447_v21 = vsel %vm388_vm1, %v446_v20, 0.0 }
 0x13c   : > { %448 = vadd.xlane.f32.xlu0 %v447_v21 }
 0x1c1   : > { %v443_v24 = vpop.xlane.xlu0 %442 }
 0x1c2   : > { %v445_v25 = vmul.f32 0.03125, %v443_v24 }
 0x1c4   : > { %v451_v27 = vmul.f32 %v445_v25, %v445_v25  ;;  %v454_v32 = vsub.f32 %v440_v18, %v445_v25 }
 0x1c5   : > { %v449_v26 = vpop.xlane.xlu0 %448 }
 0x1c6   : > { %v450_v28 = vmul.f32 0.03125, %v449_v26 }
 0x1c8   : > { %v452_v29 = vsub.f32 %v450_v28, %v451_v27 }
 0x1ca   : > { %v453_v30 = vmax.f32 %v452_v29, 0.0 }
 0x1cc   : > { %v455_v31 = vadd.f32 1e-12, %v453_v30 }
 0x1ce   : > { %816 = vrsqrt.f32 %v455_v31 }
 0x1db   : > { %v817_v33 = vpop.eup %816 }
 0x1dc   : > { %v457_v35 = vmul.f32 %v817_v33, %v454_v32 }
 0x1de   : > { %v465_v37 = vmul.f32 %v691_v34, %v457_v35 }
 0x1e0   : > { %v473_v38 = vadd.f32 %v692_v36, %v465_v37 }
 0x1e2   : > { %v474_v39 = vpack.c.bf16 %v473_v38, %v473_v38 }
 0x1e4   : > { %476 = vst.msk [vmem:[#allocation2] sm:$0xf] %vm475_vm2, %v474_v39 }
 0x1eb   : > { %v477_v40 = vld [vmem:[#allocation2] sm:$0xf] }
 0x1ec   : > { %720 = vmatmul.mubr.msk.bf16.vlgmr.msra.gmra.mxu1 %vm388_vm1, %v477_v40 }
 0x2ac   : > { %v539_v42 = vpop.f32.mrf.mxu1 }
 0x2ad   : > { %v540_v43 = vadd.f32 %v693_v41, %v539_v42 }
 0x2ae   : > { %v721_v44 = vpop.f32.mrf.mxu1 }
 0x2af   : > { %545 = vst [vmem:[%s355_s17] sm:$0xff] %v540_v43 }
 0x2b0   : > { %v542_v45 = vpop.f32.mrf.mxu1 }
 0x2b1   : > { %911 = shalt.err (!%p908_p5)
}
 0x2b2   : > { %s912_s13 = scalar_lea.hbm %s1187_s30, 128  ;;  %s916_s8 = scalar_lea.hbm %s1242_s7, 256 }
 0x2b3   : > { %p913_p10 = scmp.ne.s32.totalorder %s1187_s30, %s912_s13  ;;  %p917_p6 = scmp.lt.s32.totalorder %s1187_s30, %s1242_s7 }
 0x2b4   : > { %p918_p12 = scmp.lt.s32.totalorder %s916_s8, %s912_s13 }
 0x2b5   : > { %p914_p1 = pnand %p913_p10, %p1127_p7 }
 0x2b6   : > { %p919_p3 = por %p918_p12, %p917_p6 }
 0x2b7   : > { %p915_p4 = pneg %p914_p1 }
 0x2b9   : > { %p920_p8 = pnand %p919_p3, %p915_p4 }
 0x2bb   : > { %923 = shalt.err (!%p920_p8)
}
 0x2bc   : > { %733 = dma.vmem_to_hbm [thread:$0]  (%p1127_p7), %s1189_s20, 128, %s1187_s30, %s547_s1   ;;  %v722_v46 = vpop.f32.mrf.mxu1 }
 0x2bd PF: > { %s573_s19 = sand.u32 1, %s962_s24   ;;  %p1262_p9 = scmp.ne.s32.totalorder %s1252_s12, 0 }
 0x2be   : > { %p1263_p11 = scmp.ge.s32.totalorder %s982_s29, 2  ;;  %s574_s17 = scalar_lea.sflag [#allocation5], %s573_s19 }
 0x2c0   : > { %p747_p2 = pnand %p1263_p11, %p1262_p9 }
 0x2c2   : > { %p748_p13 = pneg %p747_p2 }
 0x2c4   : > { %957 = dma.done.wait (%p748_p13), %s574_s17, 128  }
 0x2c5   : > { %959 = vsyncadd (%p748_p13), %s574_s17, 4294967168  ;;  %s24_s29 = sadd.s32 1, %s982_s29   ;;  %s1264_s16 = sld [smem:[#allocation13_spill]] }
 0x2c6   : > { %p21_p0 = scmp.ge.s32.totalorder %s24_s29, 4   ;;  %s1265_s24 = smov %s966_s25 }
 0x2c7   : > { %s1266_s25 = smov %s970_s26  ;;  %s1267_s26 = smov %s1136_s21 }
 0x2c8   : > { %s1268_s27 = smov %s978_s28  ;;  %23 = sbr.rel (!%p21_p0) target bundleno = 10 (0xa), region = 109 }
 0x2cb   : > { %s1269_s28 = smov %s1264_s16 }
 0x2cd   :  { %579 = vsyncpa [#allocation4], 1 }
 0x2ce   :  { %581 = vsyncpa [#allocation4 + $0x1], 1 }
 0x2cf   :  { %582 = vsyncpa [#allocation7], 1 }
 0x2d0   :  { %583 = vsyncpa [#allocation5], 1 }
 0x2d1   :  { %585 = vsyncpa [#allocation5 + $0x1], 1 }

</bundles_post_ra>
